<compile_context>
chip_gen: v7x
topology: tpu7x:2x2x1
jax: 0.10.0
libtpu: 0.0.40
codegen_flags: <defaults>
</compile_context>

<pallas_src>
import jax
import jax.numpy as jnp
from jax.experimental import pallas as pl
from jax.experimental.pallas import tpu as pltpu


def _leaky_relu(x, slope=0.2):
    # nn.LeakyReLU(0.2)
    return jnp.where(x > 0, x, slope * x)


def _round_up(n, m):
    return ((n + m - 1) // m) * m


def _ceil_div(a, b):
    return -(-a // b)


# ---------------- fused Pallas kernel ----------------------------------------

def cvae_kernel(inp_ref, w1_ref, b1_ref, whead_ref, bhead_ref,
                w3_ref, b3_ref, w4_ref, b4_ref, out_ref, zy_ref):
    f32 = jnp.float32
    cd = w1_ref.dtype                       # matmul / big-elementwise dtype (bf16)

    H = w1_ref.shape[1]
    L2 = whead_ref.shape[1]
    L = L2 // 2
    F = w4_ref.shape[1]
    C = w3_ref.shape[0] - L
    Kxy = F + C                             # input slab columns: [x(F) | y(C) | eps(L)]

    # ---- encoder: h1 = LeakyReLU(cat([x, y], 1) @ W1 + b1)   (one matmul, K=F+C)
    xy = inp_ref[:, :Kxy]
    h1 = jnp.dot(xy, w1_ref[...], preferred_element_type=f32) + b1_ref[...]
    h1 = _leaky_relu(h1.astype(cd))         # bf16 elementwise on the (TB, 512) tensor

    # ---- merged head: [mu | log_std] = h1 @ [W2mu | W2ls] + [b2mu | b2ls]
    head = jnp.dot(h1, whead_ref[...], preferred_element_type=f32) + bhead_ref[...]
    mu = head[:, :L]
    log_std = head[:, L:]

    # ---- reparametrize (f32): z = mu + eps * exp(log_std)
    eps = inp_ref[:, Kxy:Kxy + L].astype(f32)
    z = mu + eps * jnp.exp(log_std)

    # ---- decoder: h3 = LeakyReLU(cat([z, y], 1) @ W3 + b3)   (one matmul, K=L+C)
    # [z | y] is assembled in a small VMEM scratch slab.
    zy_ref[:, :L] = z.astype(cd)
    zy_ref[:, L:] = inp_ref[:, F:Kxy]
    h3 = jnp.dot(zy_ref[...], w3_ref[...], preferred_element_type=f32) + b3_ref[...]
    h3 = _leaky_relu(h3.astype(cd))

    recon = jnp.tanh(jnp.dot(h3, w4_ref[...], preferred_element_type=f32) + b4_ref[...])

    # ---- single packed output slab: [mu | log_std | recon]
    out_ref[:, :L2] = head.astype(out_ref.dtype)
    out_ref[:, L2:] = recon.astype(out_ref.dtype)


# ---------------- wrapper -----------------------------------------------------

def cvae_forward(params, x, y, eps, *,
                 compute_dtype=jnp.bfloat16,
                 out_dtype=jnp.float32,
                 block_b=1024,
                 min_grid_steps=1,          # set >=2 on v7x to engage both TCs
                 single_buffer_weights=False):
    B, F = x.shape
    C = y.shape[1]
    L = eps.shape[1]
    H = params["w1"].shape[1]
    L2 = 2 * L
    Kxy = F + C
    Kin = Kxy + L                           # packed input slab width
    Wout = L2 + F                           # packed output slab width
    cd = compute_dtype

    # --- batch tiling: minimal padding, 16-row tiles for bf16 sublane packing.
    n_tiles = max(int(min_grid_steps), _ceil_div(B, int(block_b)))
    TB = _round_up(_ceil_div(B, n_tiles), 16)
    Bp = _round_up(B, TB)
    grid = Bp // TB

    # --- one packed, lane-dense input slab [x | y | eps] (bf16).
    inp = jnp.concatenate(
        [x.astype(cd), y.astype(cd), eps.astype(cd)], axis=1)
    inp = jnp.pad(inp, ((0, Bp - B), (0, 0)))

    # --- matmul operands in bf16 (f32 MXU accumulation); biases stay f32.
    w1 = params["w1"].astype(cd)
    whead = params["whead"].astype(cd)
    w3 = params["w3"].astype(cd)
    w4 = params["w4"].astype(cd)
    b1, bhead, b3, b4 = params["b1"], params["bhead"], params["b3"], params["b4"]

    def resident(arr):
        # Weights/biases live in VMEM with a constant index_map (never re-DMAed).
        if single_buffer_weights:
            return pl.BlockSpec(arr.shape, lambda i: (0, 0),
                                pipeline_mode=pl.Buffered(1))
        return pl.BlockSpec(arr.shape, lambda i: (0, 0))

    # --- explicit VMEM budget (avoid the 16/32 MiB scoped default ceiling).
    cd_b = jnp.dtype(cd).itemsize
    out_b = jnp.dtype(out_dtype).itemsize
    w_bytes = (Kxy * H + H * L2 + (L + C) * H + H * F) * cd_b
    bias_bytes = (H + L2 + H + F) * 4
    wbuf = 1 if single_buffer_weights else 2
    io_bytes = 2 * TB * Kin * cd_b + 2 * TB * Wout * out_b      # double-buffered tiles
    tmp_bytes = 2 * TB * H * (4 + cd_b) + TB * Wout * 4 + TB * (L + C) * cd_b
    est = wbuf * (w_bytes + bias_bytes) + io_bytes + tmp_bytes
    vmem_limit = int(min(max(2 * est, 16 * 1024 * 1024), 64 * 1024 * 1024))

    out = pl.pallas_call(
        cvae_kernel,
        out_shape=jax.ShapeDtypeStruct((Bp, Wout), out_dtype),
        grid_spec=pltpu.PrefetchScalarGridSpec(
            num_scalar_prefetch=0,
            grid=(grid,),
            in_specs=[pl.BlockSpec((TB, Kin), lambda i: (i, 0)),
                      resident(w1), resident(b1),
                      resident(whead), resident(bhead),
                      resident(w3), resident(b3),
                      resident(w4), resident(b4)],
            out_specs=pl.BlockSpec((TB, Wout), lambda i: (i, 0)),
            scratch_shapes=[pltpu.VMEM((TB, L + C), cd)],
        ),
        compiler_params=pltpu.CompilerParams(
            dimension_semantics=("parallel",),
            vmem_limit_bytes=vmem_limit),
    )(inp, w1, b1, whead, bhead, w3, b3, w4, b4)

    head = out[:B, :L2].astype(jnp.float32)
    recon = out[:B, L2:].astype(jnp.float32)
    mu = head[:, :L]
    log_std = head[:, L:]
    return recon, mu, log_std


# ---------------- deterministic parameter init (PyTorch-like uniform) --------

def init_params(key, feature_size, class_size, latent_size, hidden=512):
    keys = jax.random.split(key, 5)

    def lin(k, fan_in, fan_out):
        bound = 1.0 / (fan_in ** 0.5)
        kw, kb = jax.random.split(k)
        w = jax.random.uniform(kw, (fan_in, fan_out), jnp.float32, -bound, bound)
        b = jax.random.uniform(kb, (1, fan_out), jnp.float32, -bound, bound)
        return w, b

    w1, b1 = lin(keys[0], feature_size + class_size, hidden)      # fc1
    w2mu, b2mu = lin(keys[1], hidden, latent_size)                 # fc2_mu
    w2ls, b2ls = lin(keys[2], hidden, latent_size)                 # fc2_log_std
    w3, b3 = lin(keys[3], latent_size + class_size, hidden)        # fc3
    w4, b4 = lin(keys[4], hidden, feature_size)                    # fc4
    return dict(
        w1=w1, b1=b1,
        whead=jnp.concatenate([w2mu, w2ls], axis=1),
        bhead=jnp.concatenate([b2mu, b2ls], axis=1),
        w3=w3, b3=b3,
        w4=w4, b4=b4)


# ---------------- pure-JAX f32 reference for correctness check ---------------

def reference(params, x, y, eps):
    leaky = lambda v: jnp.where(v > 0, v, 0.2 * v)
    h1 = leaky(jnp.concatenate([x, y], axis=1) @ params["w1"] + params["b1"])
    head = h1 @ params["whead"] + params["bhead"]
    L = head.shape[1] // 2
    mu, ls = head[:, :L], head[:, L:]
    z = mu + eps * jnp.exp(ls)
    h3 = leaky(jnp.concatenate([z, y], axis=1) @ params["w3"] + params["b3"])
    recon = jnp.tanh(h3 @ params["w4"] + params["b4"])
    return recon, mu, ls


if __name__ == "__main__":
    B, FEATURE, CLASS, LATENT = 8, 32, 16, 8
    key = jax.random.PRNGKey(0)
    kp, kx, ky, ke = jax.random.split(key, 4)

    params = init_params(kp, FEATURE, CLASS, LATENT)
    x = jax.random.normal(kx, (B, FEATURE), jnp.float32)
    y = jax.random.normal(ky, (B, CLASS), jnp.float32)
    # TODO(synk): torch.randn_like inside reparametrize is replaced by a
    # deterministic eps generated here (could move in-kernel via
    # pltpu.prng_seed / pltpu.prng_random_bits to drop the eps columns).
    eps = jax.random.normal(ke, (B, LATENT), jnp.float32)

    recon, mu, log_std = jax.jit(cvae_forward)(params, x, y, eps)
    jax.block_until_ready((recon, mu, log_std))

    r_ref, mu_ref, ls_ref = reference(params, x, y, eps)
    # bf16 matmul operands / bf16 h1,h3,eps (f32 accumulation) -> relaxed
    # tolerance vs the f32 reference.
    assert jnp.allclose(mu, mu_ref, atol=3e-2, rtol=3e-2)
    assert jnp.allclose(log_std, ls_ref, atol=3e-2, rtol=3e-2)
    assert jnp.allclose(recon, r_ref, atol=3e-2, rtol=3e-2)

    print("KERNEL_OK")
</pallas_src>

<mosaic_0001>
module attributes {stable_mosaic.version = 11 : i64} {
  func.func @cvae_kernel(%arg0: i32, %arg1: memref<16x56xbf16, #tpu.memory_space<vmem>>, %arg2: memref<48x512xbf16, #tpu.memory_space<vmem>>, %arg3: memref<1x512xf32, #tpu.memory_space<vmem>>, %arg4: memref<512x16xbf16, #tpu.memory_space<vmem>>, %arg5: memref<1x16xf32, #tpu.memory_space<vmem>>, %arg6: memref<24x512xbf16, #tpu.memory_space<vmem>>, %arg7: memref<1x512xf32, #tpu.memory_space<vmem>>, %arg8: memref<512x32xbf16, #tpu.memory_space<vmem>>, %arg9: memref<1x32xf32, #tpu.memory_space<vmem>>, %arg10: memref<16x48xf32, #tpu.memory_space<vmem>>, %arg11: memref<16x24xbf16, #tpu.memory_space<vmem>>) attributes {dimension_semantics = [#tpu.dimension_semantics<parallel>], iteration_bounds = array<i64: 1>, scalar_prefetch = 0 : i64, scratch_operands = 1 : i64, tpu.core_type = #tpu.core_type<tc>, window_params = [{transform_indices = @transform_0, window_bounds = array<i64: 16, 56>}, {pipeline_mode = #tpu.pipeline_mode<synchronous>, transform_indices = @transform_1, window_bounds = array<i64: 48, 512>}, {pipeline_mode = #tpu.pipeline_mode<synchronous>, transform_indices = @transform_2, window_bounds = array<i64: 1, 512>}, {pipeline_mode = #tpu.pipeline_mode<synchronous>, transform_indices = @transform_3, window_bounds = array<i64: 512, 16>}, {pipeline_mode = #tpu.pipeline_mode<synchronous>, transform_indices = @transform_4, window_bounds = array<i64: 1, 16>}, {pipeline_mode = #tpu.pipeline_mode<synchronous>, transform_indices = @transform_5, window_bounds = array<i64: 24, 512>}, {pipeline_mode = #tpu.pipeline_mode<synchronous>, transform_indices = @transform_6, window_bounds = array<i64: 1, 512>}, {pipeline_mode = #tpu.pipeline_mode<synchronous>, transform_indices = @transform_7, window_bounds = array<i64: 512, 32>}, {pipeline_mode = #tpu.pipeline_mode<synchronous>, transform_indices = @transform_8, window_bounds = array<i64: 1, 32>}, {transform_indices = @transform_9, window_bounds = array<i64: 16, 48>}]} {
    %c0 = arith.constant 0 : index
    %c0_0 = arith.constant 0 : index
    %0 = vector.load %arg1[%c0, %c0_0] : memref<16x56xbf16, #tpu.memory_space<vmem>>, vector<16x48xbf16>
    %c0_1 = arith.constant 0 : index
    %c0_2 = arith.constant 0 : index
    %1 = vector.load %arg2[%c0_1, %c0_2] : memref<48x512xbf16, #tpu.memory_space<vmem>>, vector<48x512xbf16>
    %cst = arith.constant dense<0.000000e+00> : vector<16x512xf32>
    %2 = tpu.matmul %0, %1, %cst {dimension_numbers = #tpu.dot_dimension_numbers<[1], [0], [0], [1], [0, 0, 1, 1], [], []>} : vector<16x48xbf16>, vector<48x512xbf16>, vector<16x512xf32> -> vector<16x512xf32>
    %c0_3 = arith.constant 0 : index
    %c0_4 = arith.constant 0 : index
    %3 = vector.load %arg3[%c0_3, %c0_4] : memref<1x512xf32, #tpu.memory_space<vmem>>, vector<1x512xf32>
    %4 = vector.broadcast %3 : vector<1x512xf32> to vector<16x512xf32>
    %5 = arith.addf %2, %4 : vector<16x512xf32>
    %6 = arith.truncf %5 : vector<16x512xf32> to vector<16x512xbf16>
    %cst_5 = arith.constant 0.000000e+00 : bf16
    %7 = vector.broadcast %cst_5 : bf16 to vector<16x512xbf16>
    %8 = arith.cmpf ogt, %6, %7 : vector<16x512xbf16>
    %cst_6 = arith.constant 2.001950e-01 : bf16
    %9 = vector.broadcast %cst_6 : bf16 to vector<16x512xbf16>
    %10 = arith.mulf %9, %6 : vector<16x512xbf16>
    %11 = arith.select %8, %6, %10 : vector<16x512xi1>, vector<16x512xbf16>
    %c0_7 = arith.constant 0 : index
    %c0_8 = arith.constant 0 : index
    %12 = vector.load %arg4[%c0_7, %c0_8] : memref<512x16xbf16, #tpu.memory_space<vmem>>, vector<512x16xbf16>
    %cst_9 = arith.constant dense<0.000000e+00> : vector<16x16xf32>
    %13 = tpu.matmul %11, %12, %cst_9 {dimension_numbers = #tpu.dot_dimension_numbers<[1], [0], [0], [1], [0, 0, 1, 1], [], []>} : vector<16x512xbf16>, vector<512x16xbf16>, vector<16x16xf32> -> vector<16x16xf32>
    %c0_10 = arith.constant 0 : index
    %c0_11 = arith.constant 0 : index
    %14 = vector.load %arg5[%c0_10, %c0_11] : memref<1x16xf32, #tpu.memory_space<vmem>>, vector<1x16xf32>
    %15 = vector.broadcast %14 : vector<1x16xf32> to vector<16x16xf32>
    %16 = arith.addf %13, %15 : vector<16x16xf32>
    %17 = vector.extract_strided_slice %16 {offsets = [0, 0], sizes = [16, 8], strides = [1, 1]} : vector<16x16xf32> to vector<16x8xf32>
    %18 = vector.extract_strided_slice %16 {offsets = [0, 8], sizes = [16, 8], strides = [1, 1]} : vector<16x16xf32> to vector<16x8xf32>
    %c0_12 = arith.constant 0 : index
    %c48 = arith.constant 48 : index
    %19 = vector.load %arg1[%c0_12, %c48] : memref<16x56xbf16, #tpu.memory_space<vmem>>, vector<16x8xbf16>
    %20 = arith.extf %19 : vector<16x8xbf16> to vector<16x8xf32>
    %21 = math.exp %18 : vector<16x8xf32>
    %22 = arith.mulf %20, %21 : vector<16x8xf32>
    %23 = arith.addf %17, %22 : vector<16x8xf32>
    %24 = arith.truncf %23 : vector<16x8xf32> to vector<16x8xbf16>
    %c0_13 = arith.constant 0 : index
    %c0_14 = arith.constant 0 : index
    %25 = vector.load %arg11[%c0_13, %c0_14] : memref<16x24xbf16, #tpu.memory_space<vmem>>, vector<16x8xbf16>
    tpu.vector_store %arg11[%c0_13, %c0_14], %24 {strides = array<i32>} : memref<16x24xbf16, #tpu.memory_space<vmem>>, vector<16x8xbf16>,
    %c0_15 = arith.constant 0 : index
    %c32 = arith.constant 32 : index
    %26 = vector.load %arg1[%c0_15, %c32] : memref<16x56xbf16, #tpu.memory_space<vmem>>, vector<16x16xbf16>
    %c0_16 = arith.constant 0 : index
    %c8 = arith.constant 8 : index
    %27 = vector.load %arg11[%c0_16, %c8] : memref<16x24xbf16, #tpu.memory_space<vmem>>, vector<16x16xbf16>
    tpu.vector_store %arg11[%c0_16, %c8], %26 {strides = array<i32>} : memref<16x24xbf16, #tpu.memory_space<vmem>>, vector<16x16xbf16>,
    %c0_17 = arith.constant 0 : index
    %c0_18 = arith.constant 0 : index
    %28 = vector.load %arg11[%c0_17, %c0_18] : memref<16x24xbf16, #tpu.memory_space<vmem>>, vector<16x24xbf16>
    %c0_19 = arith.constant 0 : index
    %c0_20 = arith.constant 0 : index
    %29 = vector.load %arg6[%c0_19, %c0_20] : memref<24x512xbf16, #tpu.memory_space<vmem>>, vector<24x512xbf16>
    %cst_21 = arith.constant dense<0.000000e+00> : vector<16x512xf32>
    %30 = tpu.matmul %28, %29, %cst_21 {dimension_numbers = #tpu.dot_dimension_numbers<[1], [0], [0], [1], [0, 0, 1, 1], [], []>} : vector<16x24xbf16>, vector<24x512xbf16>, vector<16x512xf32> -> vector<16x512xf32>
    %c0_22 = arith.constant 0 : index
    %c0_23 = arith.constant 0 : index
    %31 = vector.load %arg7[%c0_22, %c0_23] : memref<1x512xf32, #tpu.memory_space<vmem>>, vector<1x512xf32>
    %32 = vector.broadcast %31 : vector<1x512xf32> to vector<16x512xf32>
    %33 = arith.addf %30, %32 : vector<16x512xf32>
    %34 = arith.truncf %33 : vector<16x512xf32> to vector<16x512xbf16>
    %cst_24 = arith.constant 0.000000e+00 : bf16
    %35 = vector.broadcast %cst_24 : bf16 to vector<16x512xbf16>
    %36 = arith.cmpf ogt, %34, %35 : vector<16x512xbf16>
    %cst_25 = arith.constant 2.001950e-01 : bf16
    %37 = vector.broadcast %cst_25 : bf16 to vector<16x512xbf16>
    %38 = arith.mulf %37, %34 : vector<16x512xbf16>
    %39 = arith.select %36, %34, %38 : vector<16x512xi1>, vector<16x512xbf16>
    %c0_26 = arith.constant 0 : index
    %c0_27 = arith.constant 0 : index
    %40 = vector.load %arg8[%c0_26, %c0_27] : memref<512x32xbf16, #tpu.memory_space<vmem>>, vector<512x32xbf16>
    %cst_28 = arith.constant dense<0.000000e+00> : vector<16x32xf32>
    %41 = tpu.matmul %39, %40, %cst_28 {dimension_numbers = #tpu.dot_dimension_numbers<[1], [0], [0], [1], [0, 0, 1, 1], [], []>} : vector<16x512xbf16>, vector<512x32xbf16>, vector<16x32xf32> -> vector<16x32xf32>
    %c0_29 = arith.constant 0 : index
    %c0_30 = arith.constant 0 : index
    %42 = vector.load %arg9[%c0_29, %c0_30] : memref<1x32xf32, #tpu.memory_space<vmem>>, vector<1x32xf32>
    %43 = vector.broadcast %42 : vector<1x32xf32> to vector<16x32xf32>
    %44 = arith.addf %41, %43 : vector<16x32xf32>
    %45 = math.tanh %44 : vector<16x32xf32>
    %c0_31 = arith.constant 0 : index
    %c0_32 = arith.constant 0 : index
    %46 = vector.load %arg10[%c0_31, %c0_32] : memref<16x48xf32, #tpu.memory_space<vmem>>, vector<16x16xf32>
    tpu.vector_store %arg10[%c0_31, %c0_32], %16 {strides = array<i32>} : memref<16x48xf32, #tpu.memory_space<vmem>>, vector<16x16xf32>,
    %c0_33 = arith.constant 0 : index
    %c16 = arith.constant 16 : index
    %47 = vector.load %arg10[%c0_33, %c16] : memref<16x48xf32, #tpu.memory_space<vmem>>, vector<16x32xf32>
    tpu.vector_store %arg10[%c0_33, %c16], %45 {strides = array<i32>} : memref<16x48xf32, #tpu.memory_space<vmem>>, vector<16x32xf32>,
    return
  }
  func.func @transform_0(%arg0: i32) -> (i32, i32) {
    %c0_i32 = arith.constant 0 : i32
    %c0_i32_0 = arith.constant 0 : i32
    return %arg0, %c0_i32 : i32, i32
  }
  func.func @transform_1(%arg0: i32) -> (i32, i32) {
    %c0_i32 = arith.constant 0 : i32
    %c0_i32_0 = arith.constant 0 : i32
    %c0_i32_1 = arith.constant 0 : i32
    return %c0_i32, %c0_i32_0 : i32, i32
  }
  func.func @transform_2(%arg0: i32) -> (i32, i32) {
    %c0_i32 = arith.constant 0 : i32
    %c0_i32_0 = arith.constant 0 : i32
    %c0_i32_1 = arith.constant 0 : i32
    return %c0_i32, %c0_i32_0 : i32, i32
  }
  func.func @transform_3(%arg0: i32) -> (i32, i32) {
    %c0_i32 = arith.constant 0 : i32
    %c0_i32_0 = arith.constant 0 : i32
    %c0_i32_1 = arith.constant 0 : i32
    return %c0_i32, %c0_i32_0 : i32, i32
  }
  func.func @transform_4(%arg0: i32) -> (i32, i32) {
    %c0_i32 = arith.constant 0 : i32
    %c0_i32_0 = arith.constant 0 : i32
    %c0_i32_1 = arith.constant 0 : i32
    return %c0_i32, %c0_i32_0 : i32, i32
  }
  func.func @transform_5(%arg0: i32) -> (i32, i32) {
    %c0_i32 = arith.constant 0 : i32
    %c0_i32_0 = arith.constant 0 : i32
    %c0_i32_1 = arith.constant 0 : i32
    return %c0_i32, %c0_i32_0 : i32, i32
  }
  func.func @transform_6(%arg0: i32) -> (i32, i32) {
    %c0_i32 = arith.constant 0 : i32
    %c0_i32_0 = arith.constant 0 : i32
    %c0_i32_1 = arith.constant 0 : i32
    return %c0_i32, %c0_i32_0 : i32, i32
  }
  func.func @transform_7(%arg0: i32) -> (i32, i32) {
    %c0_i32 = arith.constant 0 : i32
    %c0_i32_0 = arith.constant 0 : i32
    %c0_i32_1 = arith.constant 0 : i32
    return %c0_i32, %c0_i32_0 : i32, i32
  }
  func.func @transform_8(%arg0: i32) -> (i32, i32) {
    %c0_i32 = arith.constant 0 : i32
    %c0_i32_0 = arith.constant 0 : i32
    %c0_i32_1 = arith.constant 0 : i32
    return %c0_i32, %c0_i32_0 : i32, i32
  }
  func.func @transform_9(%arg0: i32) -> (i32, i32) {
    %c0_i32 = arith.constant 0 : i32
    %c0_i32_0 = arith.constant 0 : i32
    return %arg0, %c0_i32 : i32, i32
  }
}

</mosaic_0001>

<bundles_post_ra>
// kernel: cvae_forward.1
= control target key start
LH: loop header
LB: loop body
LE: loop exit
PB: predicated region body
PF: predicated region fallthrough
CT: control target
= control target key end

     0   :  { %v1460_v1 = vmov 0   ;;  %vm135_vm0 = vcmask 392192   ;;  %v50_v46 = vlaneseq  ;;  %vm1152_vm5 = vcmask 130048   ;;  %s1461_s17 = smov 40   ;;  %s1463_s10 = smov 80   ;;  %s1827_s1 = inlined_call_operand.vmem [shape: bf16[48,512], index: 1, kind: input, shape index: {}]   ;;  %s1828_s0 = inlined_call_operand.vmem [shape: bf16[16,56], index: 0, kind: input, shape index: {}]   ;;  %s1829_s3 = inlined_call_operand.vmem [shape: bf16[512,16], index: 3, kind: input, shape index: {}]   ;;  %s1830_s2 = inlined_call_operand.vmem [shape: f32[1,512], index: 2, kind: input, shape index: {}]   ;;  %s1831_s4 = inlined_call_operand.vmem [shape: f32[1,16], index: 4, kind: input, shape index: {}]   ;;  %s1832_s9 = inlined_call_operand.vmem [shape: f32[16,48], index: 9, kind: output, shape index: {}]   ;;  %s1833_s5 = inlined_call_operand.vmem [shape: bf16[24,512], index: 5, kind: input, shape index: {}]   ;;  %s1834_s7 = inlined_call_operand.vmem [shape: bf16[512,32], index: 7, kind: input, shape index: {}]   ;;  %s1835_s6 = inlined_call_operand.vmem [shape: f32[1,512], index: 6, kind: input, shape index: {}]   ;;  %s1836_s8 = inlined_call_operand.vmem [shape: f32[1,32], index: 8, kind: input, shape index: {}]  }
   0x1   :  { %v1357_v0 = vld [vmem:[%s1827_s1 + $0x4] ss:$16 sps:$4 sm:$0xff]   ;;  %171 = vmatprep.mubr.bf16.mxu0 %v1460_v1  ;;  %214 = vmatprep.mubr.bf16.mxu1 %v1460_v1  ;;  %v1359_v2 = vld [vmem:[%s1827_s1 + $0xc] ss:$16 sps:$4 sm:$0xff]   ;;  %v1361_v3 = vld [vmem:[%s1827_s1] ss:$16 sps:$4 sm:$0xff]  }
   0x2   :  { %139 = vmatprep.subr.bf16.mxu0 %v1357_v0  ;;  %v1362_v4 = vld [vmem:[%s1827_s1 + $0x8] ss:$16 sps:$4 sm:$0xff]   ;;  %182 = vmatprep.subr.bf16.mxu1 %v1359_v2  ;;  %v1363_v5 = vld [vmem:[%s1827_s1 + $0x24] ss:$16 sps:$4 sm:$0xff]   ;;  %v1365_v6 = vld [vmem:[%s1827_s1 + $0x2c] ss:$16 sps:$4 sm:$0xff]  }
   0x3   :  { %140 = vmatpush1.bf16.msra.mxu0 %v1361_v3  ;;  %183 = vmatpush1.bf16.msra.mxu1 %v1362_v4  ;;  %v1367_v7 = vld [vmem:[%s1827_s1 + $0x20] ss:$16 sps:$4 sm:$0xff]   ;;  %v1368_v8 = vld [vmem:[%s1827_s1 + $0x28] ss:$16 sps:$4 sm:$0xff]   ;;  %v1369_v9 = vld [vmem:[%s1827_s1 + $0x44] ss:$16 sps:$4 sm:$0xff]  }
   0x4   :  { %141 = vmatprep.subr.bf16.mxu0 %v1363_v5  ;;  %184 = vmatprep.subr.bf16.mxu1 %v1365_v6  ;;  %v1371_v10 = vld [vmem:[%s1827_s1 + $0x4c] ss:$16 sps:$4 sm:$0xff]   ;;  %v1373_v11 = vld [vmem:[%s1827_s1 + $0x40] ss:$16 sps:$4 sm:$0xff]   ;;  %v1374_v12 = vld [vmem:[%s1827_s1 + $0x48] ss:$16 sps:$4 sm:$0xff]  }
   0x5   :  { %v1556_v13 = vld [vmem:[%s1828_s0] sm:$0xff]   ;;  %v1380_v18 = vld [vmem:[%s1829_s3 + $0x48] sm:$0xff]   ;;  %v1384_v22 = vld [vmem:[%s1829_s3 + $0x50] sm:$0xff]   ;;  %v1656_v47 = vshrl.u32 %v50_v46, 7  ;;  %s1462_s1 = smov 104   ;;  %vm690_vm6 = vcmask 1043456  }
   0x6   :  { %v1376_v14 = vld [vmem:[%s1829_s3 + $0x40] sm:$0xff]   ;;  %v1381_v19 = vld [vmem:[%s1829_s3 + $0xc8] sm:$0xff]   ;;  %v1385_v23 = vld [vmem:[%s1829_s3 + $0xd0] sm:$0xff]   ;;  %vm613_vm7 = vcmask 64512   ;;  %vm625_vm8 = vcmask 195648   ;;  %vm686_vm9 = vcmask 195584  }
   0x7   :  { %142 = vmatpush1.bf16.msra.mxu0 %v1367_v7  ;;  %185 = vmatpush1.bf16.msra.mxu1 %v1368_v8  ;;  %v1377_v15 = vld [vmem:[%s1829_s3 + $0xc0] sm:$0xff]   ;;  %v1382_v20 = vld [vmem:[%s1829_s3 + $0x8] sm:$0xff]   ;;  %v1386_v24 = vld [vmem:[%s1829_s3 + $0x10] sm:$0xff]   ;;  %v60_v48 = vsub.s32 2, %v1656_v47  ;;  %v64_v49 = vsub.s32 3, %v1656_v47  ;;  %v52_v50 = vsub.s32 0, %v1656_v47 }
   0x8   :  { %143 = vmatprep.subr.bf16.mxu0 %v1369_v9  ;;  %186 = vmatprep.subr.bf16.mxu1 %v1371_v10  ;;  %v1378_v16 = vld [vmem:[%s1829_s3] sm:$0xff]   ;;  %v1383_v21 = vld [vmem:[%s1829_s3 + $0x88] sm:$0xff]   ;;  %v1387_v25 = vld [vmem:[%s1829_s3 + $0x90] sm:$0xff]   ;;  %v56_v52 = vsub.s32 1, %v1656_v47  ;;  %s1464_s19 = smov 16   ;;  %vm1163_vm14 = vcmask 392320  }
   0x9   :  { %v1379_v17 = vld [vmem:[%s1829_s3 + $0x80] sm:$0xff]   ;;  %v1388_v26 = vld [vmem:[%s1829_s3 + $0x58] sm:$0xff]   ;;  %v1396_v34 = vld [vmem:[%s1829_s3 + $0x68] sm:$0xff]  }
   0xa   :  { %v1389_v27 = vld [vmem:[%s1829_s3 + $0xd8] sm:$0xff]   ;;  %v1392_v30 = vld [vmem:[%s1829_s3 + $0x60] sm:$0xff]   ;;  %v1397_v35 = vld [vmem:[%s1829_s3 + $0xe8] sm:$0xff]  }
   0xb   :  { %144 = vmatpush1.bf16.msra.mxu0 %v1373_v11  ;;  %187 = vmatpush1.bf16.msra.mxu1 %v1374_v12  ;;  %v1390_v28 = vld [vmem:[%s1829_s3 + $0x18] sm:$0xff]   ;;  %v1393_v31 = vld [vmem:[%s1829_s3 + $0xe0] sm:$0xff]   ;;  %v1398_v36 = vld [vmem:[%s1829_s3 + $0x28] sm:$0xff]  }
   0xc   :  { %1264 = vmatprep.subr.bf16.mxu0 %v1376_v14  ;;  %1286 = vmatprep.subr.bf16.mxu1 %v1377_v15  ;;  %v1391_v29 = vld [vmem:[%s1829_s3 + $0x98] sm:$0xff]   ;;  %v1394_v32 = vld [vmem:[%s1829_s3 + $0x20] sm:$0xff]   ;;  %v1399_v37 = vld [vmem:[%s1829_s3 + $0xa8] sm:$0xff]  }
   0xd   :  { %v1395_v33 = vld [vmem:[%s1829_s3 + $0xa0] sm:$0xff]   ;;  %v1400_v38 = vld [vmem:[%s1829_s3 + $0x70] sm:$0xff]   ;;  %v1404_v42 = vld [vmem:[%s1829_s3 + $0x78] sm:$0xff]  }
   0xe   :  { %1183 = vmatmul.mubr.msk.bf16.vlgmr.msra.gmra.mrb[0].mxu0 %vm135_vm0, %v1556_v13  ;;  %1184 = vmatmul.mubr.msk.bf16.vlgmr.msra.gmra.mrb[0].mxu1 %vm135_vm0, %v1556_v13  ;;  %v1401_v39 = vld [vmem:[%s1829_s3 + $0xf0] sm:$0xff]   ;;  %v1405_v43 = vld [vmem:[%s1829_s3 + $0xf8] sm:$0xff]   ;;  %v48_v51 = vld [vmem:[%s1830_s2] sm:$0xf] }
   0xf   :  { %1265 = vmatpush3.bf16.msra.mxu0 %v1378_v16  ;;  %1287 = vmatpush3.bf16.msra.mxu1 %v1379_v17  ;;  %v1402_v40 = vld [vmem:[%s1829_s3 + $0x30] sm:$0xff]   ;;  %v1406_v44 = vld [vmem:[%s1829_s3 + $0x38] sm:$0xff]   ;;  %v61_v53 = vrot.slane %v48_v51, %v60_v48  ;;  %v65_v54 = vrot.slane %v48_v51, %v64_v49  ;;  %v53_v55 = vrot.slane %v48_v51, %v52_v50 }
  0x10   :  { %1266 = vmatprep.subr.bf16.mxu0 %v1380_v18  ;;  %1288 = vmatprep.subr.bf16.mxu1 %v1381_v19  ;;  %v1403_v41 = vld [vmem:[%s1829_s3 + $0xb0] sm:$0xff]   ;;  %v1407_v45 = vld [vmem:[%s1829_s3 + $0xb8] sm:$0xff]   ;;  %v57_v58 = vrot.slane %v48_v51, %v56_v52 }
  0x11   :  { %v1411_v46 = vld [vmem:[%s1833_s5 + $0x4] ss:$16 sps:$4 sm:$0xff]   ;;  %v1412_v51 = vld [vmem:[%s1833_s5 + $0x8] ss:$16 sps:$4 sm:$0xff]  }
  0x13   :  { %1267 = vmatpush3.bf16.msra.mxu0 %v1382_v20  ;;  %1289 = vmatpush3.bf16.msra.mxu1 %v1383_v21 }
  0x14   :  { %1268 = vmatprep.subr.bf16.mxu0 %v1384_v22  ;;  %1290 = vmatprep.subr.bf16.mxu1 %v1385_v23 }
  0x17   :  { %1269 = vmatpush3.bf16.msra.mxu0 %v1386_v24  ;;  %1291 = vmatpush3.bf16.msra.mxu1 %v1387_v25  ;;  %v1185_v25 = vld [vmem:[%s1831_s4] ss:$0 sm:$0xff] }
  0x18   :  { %1270 = vmatprep.subr.bf16.mxu0 %v1388_v26  ;;  %1292 = vmatprep.subr.bf16.mxu1 %v1389_v27 }
  0x1b   :  { %1271 = vmatpush3.bf16.msra.mxu0 %v1390_v28  ;;  %1293 = vmatpush3.bf16.msra.mxu1 %v1391_v29 }
  0x1c   :  { %1272 = vmatprep.subr.bf16.mxu0 %v1392_v30  ;;  %1294 = vmatprep.subr.bf16.mxu1 %v1393_v31 }
  0x1f   :  { %1273 = vmatpush3.bf16.msra.mxu0 %v1394_v32  ;;  %1295 = vmatpush3.bf16.msra.mxu1 %v1395_v33 }
  0x20   :  { %1274 = vmatprep.subr.bf16.mxu0 %v1396_v34  ;;  %1296 = vmatprep.subr.bf16.mxu1 %v1397_v35 }
  0x23   :  { %1275 = vmatpush3.bf16.msra.mxu0 %v1398_v36  ;;  %1297 = vmatpush3.bf16.msra.mxu1 %v1399_v37 }
  0x24   :  { %1276 = vmatprep.subr.bf16.mxu0 %v1400_v38  ;;  %1298 = vmatprep.subr.bf16.mxu1 %v1401_v39 }
  0x27   :  { %1277 = vmatpush3.bf16.msra.mxu0 %v1402_v40  ;;  %1299 = vmatpush3.bf16.msra.mxu1 %v1403_v41 }
  0x28   :  { %1278 = vmatprep.subr.bf16.mxu0 %v1404_v42  ;;  %1300 = vmatprep.subr.bf16.mxu1 %v1405_v43  ;;  %v1408_v43 = vld [vmem:[%s1828_s0] sm:$0xff]  }
  0x2b   :  { %1279 = vmatpush3.bf16.msra.mxu0 %v1406_v44  ;;  %1301 = vmatpush3.bf16.msra.mxu1 %v1407_v45  ;;  %v586_v44 = vunpack.c.l.bf16 %v1556_v13  ;;  %v1409_v45 = vld [vmem:[%s1833_s5] ss:$16 sps:$4 sm:$0xff]  }
  0x2c   :  { %703 = vmatprep.subr.bf16.mxu0 %v1411_v46 }
  0xe1   :  { %v173_v56 = vpop.f32.mrb[0].mxu0  ;;  %v216_v57 = vpop.f32.mrb[0].mxu1 }
  0xe2   :  { %v217_v59 = vadd.f32 %v216_v57, %v61_v53  ;;  %v175_v60 = vpop.f32.mrb[1].mxu0  ;;  %v218_v61 = vpop.f32.mrb[1].mxu1  ;;  %v174_v2 = vadd.f32 %v173_v56, %v53_v55 }
  0xe3   :  { %v219_v62 = vadd.f32 %v218_v61, %v65_v54  ;;  %v177_v63 = vpop.f32.mrb[2].mxu0  ;;  %v220_v0 = vpop.f32.mrb[2].mxu1  ;;  %v176_v7 = vadd.f32 %v175_v60, %v57_v58  ;;  %v587_v60 = vunpack.c.h.bf16 %v1556_v13  ;;  %v1419_v13 = vld [vmem:[%s1834_s7 + $0x40] sm:$0xff]  }
  0xe4   :  { %v178_v3 = vadd.f32 %v177_v63, %v53_v55  ;;  %v221_v4 = vadd.f32 %v220_v0, %v61_v53  ;;  %v179_v5 = vpop.f32.mrb[3].mxu0  ;;  %v222_v6 = vpop.f32.mrb[3].mxu1  ;;  %v1414_v53 = vld [vmem:[%s1833_s5 + $0xc] ss:$16 sps:$4 sm:$0xff]  }
  0xe5   :  { %v180_v8 = vadd.f32 %v179_v5, %v57_v58  ;;  %v223_v9 = vadd.f32 %v222_v6, %v65_v54  ;;  %v632_v54 = vld [vmem:[%s1833_s5 + $0x20] sm:$0xff]  ;;  %v633_v58 = vld [vmem:[%s1833_s5 + $0x28] sm:$0xff]  ;;  %746 = vmatprep.subr.bf16.mxu1 %v1414_v53 }
  0xe6   :  { %v225_v10 = vpack.c.bf16 %v178_v3, %v174_v2  ;;  %v227_v11 = vpack.c.bf16 %v221_v4, %v217_v59  ;;  %v1224_v56 = vcombine.high %v632_v54, %v632_v54  ;;  %v1223_v57 = vcombine.low %v632_v54, %v632_v54  ;;  %v1420_v4 = vld [vmem:[%s1834_s7 + $0xc0] sm:$0xff]  }
  0xe7   :  { %v226_v12 = vpack.c.bf16 %v180_v8, %v176_v7  ;;  %v228_v14 = vpack.c.bf16 %v223_v9, %v219_v62  ;;  %v1226_v61 = vcombine.high %v633_v58, %v633_v58  ;;  %v1225_v62 = vcombine.low %v633_v58, %v633_v58 }
  0xe8   :  { %v233_v15 = vmul.bf16 1045249613, %v225_v10  ;;  %v235_v16 = vmul.bf16 1045249613, %v227_v11  ;;  %vm229_vm1 = vcmp.gt.bf16.partialorder %v225_v10, 0  ;;  %vm231_vm2 = vcmp.gt.bf16.partialorder %v227_v11, 0 }
  0xe9   :  { %vm230_vm3 = vcmp.gt.bf16.partialorder %v226_v12, 0  ;;  %v234_v17 = vmul.bf16 1045249613, %v226_v12  ;;  %vm232_vm4 = vcmp.gt.bf16.partialorder %v228_v14, 0  ;;  %v236_v18 = vmul.bf16 1045249613, %v228_v14 }
  0xea   :  { %v237_v21 = vsel %vm229_vm1, %v225_v10, %v233_v15  ;;  %v239_v22 = vsel %vm231_vm2, %v227_v11, %v235_v16  ;;  %v692_v63 = vsel %vm690_vm6, %v1223_v57, 0  ;;  %v698_v0 = vsel %vm690_vm6, %v1225_v62, 0  ;;  %v1421_v11 = vld [vmem:[%s1834_s7] sm:$0xff]   ;;  %v1424_v15 = vld [vmem:[%s1834_s7 + $0xc8] sm:$0xff]  }
  0xeb   :  { %v238_v19 = vsel %vm230_vm3, %v226_v12, %v234_v17  ;;  %v240_v20 = vsel %vm232_vm4, %v228_v14, %v236_v18  ;;  %v1422_v12 = vld [vmem:[%s1834_s7 + $0x80] sm:$0xff]   ;;  %v1423_v14 = vld [vmem:[%s1834_s7 + $0x48] sm:$0xff]  }
  0xec   :  { %536 = vmatprep.mubr.bf16.mxu0 %v238_v19  ;;  %577 = vmatprep.mubr.bf16.mxu1 %v240_v20  ;;  %v1425_v17 = vld [vmem:[%s1834_s7 + $0x8] sm:$0xff]   ;;  %v1427_v19 = vld [vmem:[%s1834_s7 + $0x50] sm:$0xff]  }
  0xed   :  { %537 = vmatmul.mubr.bf16.vlgmr.msra.gmra.mrb[4].mxu0 %v237_v21  ;;  %578 = vmatmul.mubr.bf16.vlgmr.msra.gmra.mrb[4].mxu1 %v239_v22  ;;  %v1426_v18 = vld [vmem:[%s1834_s7 + $0x88] sm:$0xff]   ;;  %v1428_v20 = vld [vmem:[%s1834_s7 + $0xd0] sm:$0xff]  }
  0xee   :  { %735 = vmatprep.mubr.bf16.mxu0 %v1460_v1  ;;  %778 = vmatprep.mubr.bf16.mxu1 %v1460_v1  ;;  %v1429_v21 = vld [vmem:[%s1834_s7 + $0x10] sm:$0xff]  }
  0xef   :  { %704 = vmatpush1.bf16.msra.mxu0 %v1409_v45  ;;  %747 = vmatpush1.bf16.msra.mxu1 %v1412_v51  ;;  %v1430_v22 = vld [vmem:[%s1834_s7 + $0x90] sm:$0xff]  }
  0xf0   :  { %1227 = vmatprep.subr.msk.bf16.mxu0 %vm690_vm6, %v1224_v56  ;;  %1229 = vmatprep.subr.msk.bf16.mxu1 %vm690_vm6, %v1226_v61 }
  0xf3   :  { %706 = vmatpush1.bf16.msra.mxu0 %v692_v63  ;;  %749 = vmatpush1.bf16.msra.mxu1 %v698_v0 }
  0xf4   :  { %1308 = vmatprep.subr.bf16.mxu0 %v1419_v13  ;;  %1330 = vmatprep.subr.bf16.mxu1 %v1420_v4 }
 0x1c0   :  { %v1280_v23 = vpop.f32.mrb[4].mxu0  ;;  %v1302_v24 = vpop.f32.mrb[4].mxu1 }
 0x1c1   :  { %v1281_v26 = vpop.f32.mrb[5].mxu0  ;;  %v1303_v27 = vpop.f32.mrb[5].mxu1 }
 0x1c2   :  { %v1282_v28 = vadd.f32 %v1281_v26, %v1280_v23  ;;  %v1304_v29 = vadd.f32 %v1303_v27, %v1302_v24  ;;  %v1283_v30 = vpop.f32.mrb[6].mxu0  ;;  %v1305_v31 = vpop.f32.mrb[6].mxu1  ;;  %v1431_v23 = vld [vmem:[%s1834_s7 + $0x58] sm:$0xff]   ;;  %v1435_v27 = vld [vmem:[%s1834_s7 + $0x60] sm:$0xff]  }
 0x1c3   :  { %v1284_v32 = vpop.f32.mrb[7].mxu0  ;;  %v1306_v33 = vpop.f32.mrb[7].mxu1  ;;  %v1432_v24 = vld [vmem:[%s1834_s7 + $0xd8] sm:$0xff]  }
 0x1c4   :  { %v539_v34 = vadd.f32 %v1282_v28, %v1185_v25  ;;  %v1285_v35 = vadd.f32 %v1284_v32, %v1283_v30  ;;  %v1307_v36 = vadd.f32 %v1306_v33, %v1305_v31  ;;  %v1434_v26 = vld [vmem:[%s1834_s7 + $0x98] sm:$0xff]   ;;  %v1436_v28 = vld [vmem:[%s1834_s7 + $0xe0] sm:$0xff]   ;;  %v1439_v31 = vld [vmem:[%s1834_s7 + $0x68] sm:$0xff]  }
 0x1c5   :  { %v1438_v30 = vld [vmem:[%s1834_s7 + $0xa0] sm:$0xff]   ;;  %v1440_v32 = vld [vmem:[%s1834_s7 + $0xe8] sm:$0xff]  }
 0x1c6   :  { %v580_v37 = vadd.f32 %v1304_v29, %v539_v34  ;;  %v542_v1 = vadd.f32 %v1285_v35, %v1185_v25  ;;  %v1433_v25 = vld [vmem:[%s1834_s7 + $0x18] sm:$0xff]   ;;  %v1437_v29 = vld [vmem:[%s1834_s7 + $0x20] sm:$0xff]   ;;  %v1441_v33 = vld [vmem:[%s1834_s7 + $0x28] sm:$0xff]  }
 0x1c7   :  { %v1442_v34 = vld [vmem:[%s1834_s7 + $0xa8] sm:$0xff]   ;;  %v1443_v35 = vld [vmem:[%s1834_s7 + $0x70] sm:$0xff]  }
 0x1c8   :  { %v588_v38 = vmul.f32 1.442695, %v580_v37  ;;  %1153 = vst.msk [vmem:[%s1832_s9] sm:$0xff] %vm1152_vm5, %v580_v37  ;;  %v583_v39 = vadd.f32 %v1307_v36, %v542_v1  ;;  %v1444_v36 = vld [vmem:[%s1834_s7 + $0xf0] sm:$0xff]  }
 0x1c9   :  { %v1446_v1 = vld [vmem:[%s1834_s7 + $0xb0] sm:$0xff]  }
 0x1ca   :  { %1452 = vpow2.f32 %v588_v38  ;;  %v590_v40 = vmul.f32 1.442695, %v583_v39  ;;  %1154 = vst.msk [vmem:[%s1832_s9 + $0x8] sm:$0xff] %vm1152_vm5, %v583_v39  ;;  %v1447_v38 = vld [vmem:[%s1834_s7 + $0x78] sm:$0xff]  }
 0x1cc   :  { %1454 = vpow2.f32 %v590_v40  ;;  %v1449_v40 = vld [vmem:[%s1834_s7 + $0x38] sm:$0xff]  }
 0x1d4   :  { %v1453_v41 = vpop.eup %1452 }
 0x1d5   :  { %594 = vrot.lane.b32.xlu0 %v1453_v41, %s1461_s17  ;;  %v1450_v41 = vld [vmem:[%s1834_s7 + $0xb8] sm:$0xff]  }
 0x1d6   :  { %v1455_v42 = vpop.eup %1454 }
 0x1d9   :  { %596 = vrot.lane.b32.xlu0 %v1455_v42, %s1461_s17  ;;  %v634_v42 = vld [vmem:[%s1835_s6] sm:$0xf] }
 0x1da   :  { %v643_v51 = vrot.slane %v634_v42, %v56_v52  ;;  %v651_v53 = vrot.slane %v634_v42, %v64_v49 }
 0x1dd   :  { %622 = vrot.lane.b32.xlu0 %v1408_v43, %s1462_s1  ;;  %v639_v43 = vrot.slane %v634_v42, %v52_v50 }
 0x247   :  { %v595_v55 = vpop.permute.xlu0 %594 }
 0x248   :  { %v600_v59 = vmul.f32 %v595_v55, %v586_v44  ;;  %v647_v44 = vrot.slane %v634_v42, %v60_v48 }
 0x24a   :  { %604 = vrot.lane.b32.xlu1 %v600_v59, %s1463_s10 }
 0x24b   :  { %v597_v2 = vpop.permute.xlu0 %596 }
 0x24c   :  { %v601_v3 = vmul.f32 %v597_v2, %v587_v60 }
 0x24e   :  { %606 = vrot.lane.b32.xlu1 %v601_v3, %s1463_s10 }
 0x24f   :  { %v623_v10 = vpop.permute.xlu0 %622 }
 0x2bc   :  { %v605_v5 = vpop.permute.xlu1 %604 }
 0x2bd   :  { %v610_v7 = vadd.f32 %v605_v5, %v580_v37  ;;  %v1445_v37 = vld [vmem:[%s1834_s7 + $0x30] sm:$0xff]  }
 0x2c0   :  { %v607_v6 = vpop.permute.xlu1 %606 }
 0x2c1   :  { %v611_v8 = vadd.f32 %v607_v6, %v583_v39  ;;  %v1448_v39 = vld [vmem:[%s1834_s7 + $0xf8] sm:$0xff]  }
 0x2c3   :  { %v612_v9 = vpack.c.bf16 %v611_v8, %v610_v7 }
 0x2c5   :  { %614 = vst.msk [vmem:[#allocation2] sm:$0xff] %vm613_vm7, %v612_v9 }
 0x2c6   :  { %626 = vst.msk [vmem:[#allocation2] sm:$0xff] %vm625_vm8, %v623_v10 }
 0x2cd   :  { %v627_v16 = vld [vmem:[#allocation2] sm:$0xff] }
 0x2ce   :  { %1228 = vmatmul.mubr.msk.bf16.vlgmr.msra.gmra.mrb[8].mxu0 %vm686_vm9, %v627_v16  ;;  %1230 = vmatmul.mubr.msk.bf16.vlgmr.msra.gmra.mrb[8].mxu1 %vm686_vm9, %v627_v16 }
 0x2cf   :  { %1309 = vmatpush3.bf16.msra.mxu0 %v1421_v11  ;;  %1331 = vmatpush3.bf16.msra.mxu1 %v1422_v12 }
 0x2d0   :  { %1310 = vmatprep.subr.bf16.mxu0 %v1423_v14  ;;  %1332 = vmatprep.subr.bf16.mxu1 %v1424_v15  ;;  %v1231_v14 = vld [vmem:[%s1836_s8] ss:$0 sm:$0xff] }
 0x2d3   :  { %1311 = vmatpush3.bf16.msra.mxu0 %v1425_v17  ;;  %1333 = vmatpush3.bf16.msra.mxu1 %v1426_v18 }
 0x2d4   :  { %1312 = vmatprep.subr.bf16.mxu0 %v1427_v19  ;;  %1334 = vmatprep.subr.bf16.mxu1 %v1428_v20 }
 0x2d7   :  { %1313 = vmatpush3.bf16.msra.mxu0 %v1429_v21  ;;  %1335 = vmatpush3.bf16.msra.mxu1 %v1430_v22 }
 0x2d8   :  { %1314 = vmatprep.subr.bf16.mxu0 %v1431_v23  ;;  %1336 = vmatprep.subr.bf16.mxu1 %v1432_v24 }
 0x2db   :  { %1315 = vmatpush3.bf16.msra.mxu0 %v1433_v25  ;;  %1337 = vmatpush3.bf16.msra.mxu1 %v1434_v26 }
 0x2dc   :  { %1316 = vmatprep.subr.bf16.mxu0 %v1435_v27  ;;  %1338 = vmatprep.subr.bf16.mxu1 %v1436_v28 }
 0x2df   :  { %1317 = vmatpush3.bf16.msra.mxu0 %v1437_v29  ;;  %1339 = vmatpush3.bf16.msra.mxu1 %v1438_v30 }
 0x2e0   :  { %1318 = vmatprep.subr.bf16.mxu0 %v1439_v31  ;;  %1340 = vmatprep.subr.bf16.mxu1 %v1440_v32 }
 0x2e3   :  { %1319 = vmatpush3.bf16.msra.mxu0 %v1441_v33  ;;  %1341 = vmatpush3.bf16.msra.mxu1 %v1442_v34 }
 0x2e4   :  { %1320 = vmatprep.subr.bf16.mxu0 %v1443_v35  ;;  %1342 = vmatprep.subr.bf16.mxu1 %v1444_v36 }
 0x2e7   :  { %1321 = vmatpush3.bf16.msra.mxu0 %v1445_v37  ;;  %1343 = vmatpush3.bf16.msra.mxu1 %v1446_v1 }
 0x2e8   :  { %1322 = vmatprep.subr.bf16.mxu0 %v1447_v38  ;;  %1344 = vmatprep.subr.bf16.mxu1 %v1448_v39 }
 0x2eb   :  { %1323 = vmatpush3.bf16.msra.mxu0 %v1449_v40  ;;  %1345 = vmatpush3.bf16.msra.mxu1 %v1450_v41 }
 0x3a1   :  { %v737_v45 = vpop.f32.mrb[8].mxu0  ;;  %v780_v46 = vpop.f32.mrb[8].mxu1 }
 0x3a2   :  { %v739_v54 = vpop.f32.mrb[9].mxu0  ;;  %v782_v55 = vpop.f32.mrb[9].mxu1  ;;  %v738_v58 = vadd.f32 %v737_v45, %v639_v43  ;;  %v781_v59 = vadd.f32 %v780_v46, %v647_v44 }
 0x3a3   :  { %v741_v56 = vpop.f32.mrb[10].mxu0  ;;  %v784_v57 = vpop.f32.mrb[10].mxu1  ;;  %v740_v63 = vadd.f32 %v739_v54, %v643_v51  ;;  %v783_v48 = vadd.f32 %v782_v55, %v651_v53 }
 0x3a4   :  { %v742_v60 = vadd.f32 %v741_v56, %v639_v43  ;;  %v785_v61 = vadd.f32 %v784_v57, %v647_v44  ;;  %v743_v50 = vpop.f32.mrb[11].mxu0  ;;  %v786_v62 = vpop.f32.mrb[11].mxu1 }
 0x3a5   :  { %v744_v0 = vadd.f32 %v743_v50, %v643_v51  ;;  %v787_v2 = vadd.f32 %v786_v62, %v651_v53 }
 0x3a6   :  { %v789_v3 = vpack.c.bf16 %v742_v60, %v738_v58  ;;  %v791_v13 = vpack.c.bf16 %v785_v61, %v781_v59 }
 0x3a7   :  { %v790_v52 = vpack.c.bf16 %v744_v0, %v740_v63  ;;  %v792_v4 = vpack.c.bf16 %v787_v2, %v783_v48 }
 0x3a8   :  { %v797_v47 = vmul.bf16 1045249613, %v789_v3  ;;  %v799_v49 = vmul.bf16 1045249613, %v791_v13  ;;  %vm793_vm10 = vcmp.gt.bf16.partialorder %v789_v3, 0  ;;  %vm795_vm11 = vcmp.gt.bf16.partialorder %v791_v13, 0 }
 0x3a9   :  { %vm794_vm12 = vcmp.gt.bf16.partialorder %v790_v52, 0  ;;  %v798_v5 = vmul.bf16 1045249613, %v790_v52  ;;  %vm796_vm13 = vcmp.gt.bf16.partialorder %v792_v4, 0  ;;  %v800_v6 = vmul.bf16 1045249613, %v792_v4 }
 0x3aa   :  { %v801_v9 = vsel %vm793_vm10, %v789_v3, %v797_v47  ;;  %v803_v10 = vsel %vm795_vm11, %v791_v13, %v799_v49 }
 0x3ab   :  { %v802_v7 = vsel %vm794_vm12, %v790_v52, %v798_v5  ;;  %v804_v8 = vsel %vm796_vm13, %v792_v4, %v800_v6 }
 0x3ac   :  { %1100 = vmatprep.mubr.bf16.mxu0 %v802_v7  ;;  %1141 = vmatprep.mubr.bf16.mxu1 %v804_v8 }
 0x3ad   :  { %1101 = vmatmul.mubr.bf16.vlgmr.msra.gmra.mrb[12].mxu0 %v801_v9  ;;  %1142 = vmatmul.mubr.bf16.vlgmr.msra.gmra.mrb[12].mxu1 %v803_v10 }
 0x480   :  { %v1324_v11 = vpop.f32.mrb[12].mxu0  ;;  %v1346_v12 = vpop.f32.mrb[12].mxu1 }
 0x481   :  { %v1325_v15 = vpop.f32.mrb[13].mxu0  ;;  %v1347_v16 = vpop.f32.mrb[13].mxu1 }
 0x482   :  { %v1326_v17 = vadd.f32 %v1325_v15, %v1324_v11  ;;  %v1348_v18 = vadd.f32 %v1347_v16, %v1346_v12  ;;  %v1327_v19 = vpop.f32.mrb[14].mxu0  ;;  %v1349_v20 = vpop.f32.mrb[14].mxu1 }
 0x483   :  { %v1328_v21 = vpop.f32.mrb[15].mxu0  ;;  %v1350_v22 = vpop.f32.mrb[15].mxu1 }
 0x484   :  { %v1103_v23 = vadd.f32 %v1326_v17, %v1231_v14  ;;  %v1329_v24 = vadd.f32 %v1328_v21, %v1327_v19  ;;  %v1351_v25 = vadd.f32 %v1350_v22, %v1349_v20 }
 0x486   :  { %v1144_v26 = vadd.f32 %v1348_v18, %v1103_v23  ;;  %v1106_v27 = vadd.f32 %v1329_v24, %v1231_v14 }
 0x488   :  { %1456 = vtanh.f32 %v1144_v26  ;;  %v1147_v28 = vadd.f32 %v1351_v25, %v1106_v27 }
 0x48a   :  { %1458 = vtanh.f32 %v1147_v28 }
 0x492   :  { %v1457_v29 = vpop.eup %1456 }
 0x493   :  { %1157 = vrot.lane.b32.xlu1 %v1457_v29, %s1464_s19 }
 0x494   :  { %v1459_v30 = vpop.eup %1458 }
 0x495   :  { %1159 = vrot.lane.b32.xlu0 %v1459_v30, %s1464_s19 }
 0x505   :  { %v1158_v31 = vpop.permute.xlu1 %1157 }
 0x506   :  { %1164 = vst.msk [vmem:[%s1832_s9] sm:$0xff] %vm1163_vm14, %v1158_v31 }
 0x507   :  { %v1160_v32 = vpop.permute.xlu0 %1159 }
 0x508   :  { %1165 = vst.msk [vmem:[%s1832_s9 + $0x8] sm:$0xff] %vm1163_vm14, %v1160_v32 }

</bundles_post_ra>
